<compile_context>
chip_gen: v7x
topology: tpu7x:2x2x1
jax: 0.10.0
libtpu: 0.0.40
codegen_flags: <defaults>
</compile_context>

<pallas_src>
import jax
import jax.numpy as jnp
from jax.experimental import pallas as pl
from jax.experimental.pallas import tpu as pltpu

X_DIM = 2
LATENT_DIM = 2
HIDDEN_DIM = 10
NUM_HID_LAYER = 3
BATCH = 8

LANES = 128                          # slab lane width (one vreg row)
IN_COLS = X_DIM + LATENT_DIM         # packed input  [x | eps]            = 4
OUT_COLS = 3 * LATENT_DIM + X_DIM    # packed output [mu|logvar|z|recon]  = 8
MAX_BATCH_TILE = 512                 # sized against v7x's 64 MiB VMEM budget

# ---------- packed weight-slab layout --------------------------------------
# Each Linear occupies an 8-row-aligned block in the slab: `fan_in` rows of W
# (stored (fan_in, fan_out)) followed by one bias row; lanes [0:fan_out].
_ENC_DIMS = [(X_DIM, HIDDEN_DIM)] + [(HIDDEN_DIM, HIDDEN_DIM)] * (NUM_HID_LAYER - 1) \
            + [(HIDDEN_DIM, 2 * LATENT_DIM)]
_DEC_DIMS = [(LATENT_DIM, HIDDEN_DIM)] + [(HIDDEN_DIM, HIDDEN_DIM)] * (NUM_HID_LAYER - 1) \
            + [(HIDDEN_DIM, X_DIM)]
_ALL_DIMS = _ENC_DIMS + _DEC_DIMS


def _round8(n):
    return ((n + 7) // 8) * 8


_LAYER_OFFS = []
_row = 0
for _fi, _fo in _ALL_DIMS:
    _LAYER_OFFS.append((_row, _fi, _fo))
    _row += _round8(_fi + 1)
SLAB_ROWS = _round8(_row)            # = 112


# ---------------------------- kernel ----------------------------------------
def vae_kernel(xin_ref, w_ref, out_ref):
    x = xin_ref[:, 0:X_DIM]
    eps = xin_ref[:, X_DIM:IN_COLS]

    def wb(layer):
        r, fan_in, fan_out = _LAYER_OFFS[layer]
        w = w_ref[r:r + fan_in, 0:fan_out]
        b = w_ref[r + fan_in:r + fan_in + 1, 0:fan_out]
        return w, b

    def relu(v):
        return jnp.maximum(v, 0.0)

    def fma2(v2, w, b):
        # K=2 layer on the VPU: two broadcast FMAs, no MXU round-trip.
        return v2[:, 0:1] * w[0:1, :] + v2[:, 1:2] * w[1:2, :] + b

    def mxu(h, w, b):
        return jnp.dot(h, w, preferred_element_type=jnp.float32) + b

    # ---- encoder MLP: 2 -> 10 -> 10 -> 10 -> 4 (mu|logvar fused head) ----
    w, b = wb(0)
    h = relu(fma2(x, w, b))
    for layer in range(1, NUM_HID_LAYER):
        w, b = wb(layer)
        h = relu(mxu(h, w, b))
    w, b = wb(NUM_HID_LAYER)
    head = mxu(h, w, b)                          # (TB, 2*LATENT_DIM) = [mu | logvar]
    logvar = head[:, LATENT_DIM:2 * LATENT_DIM]
    mu = head[:, 0:LATENT_DIM]

    # ---- reparameterize: z = eps * exp(0.5*logvar) + mu (f32 VPU/EUP) ----
    z = eps * jnp.exp(0.5 * logvar) + mu

    # ---- decoder MLP: 2 -> 10 -> 10 -> 10 -> 2 ----
    base = NUM_HID_LAYER + 1
    w, b = wb(base)
    d = relu(fma2(z, w, b))
    for layer in range(base + 1, base + NUM_HID_LAYER):
        w, b = wb(layer)
        d = relu(mxu(d, w, b))
    w, b = wb(base + NUM_HID_LAYER)
    recon = mxu(d, w, b)

    # single lane-packed output block (one writeback DMA): [mu|logvar|z|recon]
    out_ref[:, 0:2 * LATENT_DIM] = head
    out_ref[:, 2 * LATENT_DIM:3 * LATENT_DIM] = z
    out_ref[:, 3 * LATENT_DIM:OUT_COLS] = recon


# ---------------------------- params ----------------------------------------
def init_params(key):
    """nn.Linear-style init: U(-1/sqrt(fan_in), 1/sqrt(fan_in)) per layer."""
    keys = jax.random.split(key, len(_ALL_DIMS))
    params = []
    for k, (fan_in, fan_out) in zip(keys, _ALL_DIMS):
        kw, kb = jax.random.split(k)
        bound = 1.0 / (fan_in ** 0.5)
        w = jax.random.uniform(kw, (fan_in, fan_out), jnp.float32, -bound, bound)
        b = jax.random.uniform(kb, (fan_out,), jnp.float32, -bound, bound)
        params.append((w, b))
    return params


def pack_params(params):
    """One-time pack of all 16 weights/biases into a single (112, 128) slab."""
    # TODO(synk): at large batch on v6e/v7x, cast this slab (and activations)
    # to bf16 for the MXU while keeping f32 accumulation; irrelevant at B=8.
    slab = jnp.zeros((SLAB_ROWS, LANES), jnp.float32)
    for (w, b), (r, fan_in, fan_out) in zip(params, _LAYER_OFFS):
        slab = slab.at[r:r + fan_in, 0:fan_out].set(w)
        slab = slab.at[r + fan_in, 0:fan_out].set(b)
    return slab


# ---------------------------- wrapper ----------------------------------------
@jax.jit
def vae_forward(x, eps, w_slab):
    batch = x.shape[0]
    if batch <= MAX_BATCH_TILE:
        tile_b = batch
    else:
        assert batch % MAX_BATCH_TILE == 0, "batch must be a multiple of the tile"
        tile_b = MAX_BATCH_TILE

    xin = jnp.concatenate([x, eps], axis=1)          # (B, 4): one activation DMA

    out = pl.pallas_call(
        vae_kernel,
        out_shape=jax.ShapeDtypeStruct((batch, OUT_COLS), jnp.float32),
        grid=(batch // tile_b,),
        in_specs=[
            pl.BlockSpec((tile_b, IN_COLS), lambda i: (i, 0)),
            pl.BlockSpec((SLAB_ROWS, LANES), lambda i: (0, 0)),   # resident weights
        ],
        out_specs=pl.BlockSpec((tile_b, OUT_COLS), lambda i: (i, 0)),
        compiler_params=pltpu.CompilerParams(
            dimension_semantics=("parallel",),       # shards batch over TCs (v7x)
        ),
    )(xin, w_slab)

    mu = out[:, 0:LATENT_DIM]
    log_var = out[:, LATENT_DIM:2 * LATENT_DIM]
    z = out[:, 2 * LATENT_DIM:3 * LATENT_DIM]
    recon = out[:, 3 * LATENT_DIM:OUT_COLS]
    return mu, log_var, z, recon


# ---------------------------- reference & demo --------------------------------
def vae_reference(x, eps, params):
    enc = params[:NUM_HID_LAYER + 1]
    dec = params[NUM_HID_LAYER + 1:]
    h = x
    for w, b in enc[:-1]:
        h = jnp.maximum(h @ w + b, 0.0)
    head = h @ enc[-1][0] + enc[-1][1]
    mu, logvar = head[:, :LATENT_DIM], head[:, LATENT_DIM:]
    z = eps * jnp.exp(0.5 * logvar) + mu
    d = z
    for w, b in dec[:-1]:
        d = jnp.maximum(d @ w + b, 0.0)
    recon = d @ dec[-1][0] + dec[-1][1]
    return mu, logvar, z, recon


if __name__ == "__main__":
    key = jax.random.PRNGKey(0)
    k_params, k_x, k_eps = jax.random.split(key, 3)

    params = init_params(k_params)
    w_slab = pack_params(params)

    x = jax.random.normal(k_x, (BATCH, X_DIM), jnp.float32)
    # torch.randn_like(std) equivalent, drawn outside the kernel (deterministic)
    eps = jax.random.normal(k_eps, (BATCH, LATENT_DIM), jnp.float32)

    mu, log_var, z, recon = vae_forward(x, eps, w_slab)
    jax.block_until_ready((mu, log_var, z, recon))

    assert mu.shape == (BATCH, LATENT_DIM)
    assert log_var.shape == (BATCH, LATENT_DIM)
    assert z.shape == (BATCH, LATENT_DIM)
    assert recon.shape == (BATCH, X_DIM)

    r_mu, r_lv, r_z, r_rec = vae_reference(x, eps, params)
    for got, ref in ((mu, r_mu), (log_var, r_lv), (z, r_z), (recon, r_rec)):
        assert jnp.allclose(got, ref, rtol=2e-2, atol=2e-2), "mismatch vs JAX reference"

    print("KERNEL_OK")
</pallas_src>

<mosaic_0001>
module attributes {stable_mosaic.version = 11 : i64} {
  func.func @vae_kernel(%arg0: i32, %arg1: memref<8x4xf32, #tpu.memory_space<vmem>>, %arg2: memref<112x128xf32, #tpu.memory_space<vmem>>, %arg3: memref<8x8xf32, #tpu.memory_space<vmem>>) attributes {dimension_semantics = [#tpu.dimension_semantics<parallel>], iteration_bounds = array<i64: 1>, scalar_prefetch = 0 : i64, scratch_operands = 0 : i64, tpu.core_type = #tpu.core_type<tc>, window_params = [{transform_indices = @transform_0, window_bounds = array<i64: 8, 4>}, {pipeline_mode = #tpu.pipeline_mode<synchronous>, transform_indices = @transform_1, window_bounds = array<i64: 112, 128>}, {transform_indices = @transform_2, window_bounds = array<i64: 8, 8>}]} {
    %c0 = arith.constant 0 : index
    %c0_0 = arith.constant 0 : index
    %0 = vector.load %arg1[%c0, %c0_0] : memref<8x4xf32, #tpu.memory_space<vmem>>, vector<8x2xf32>
    %c0_1 = arith.constant 0 : index
    %c2 = arith.constant 2 : index
    %1 = vector.load %arg1[%c0_1, %c2] : memref<8x4xf32, #tpu.memory_space<vmem>>, vector<8x2xf32>
    %c0_2 = arith.constant 0 : index
    %c0_3 = arith.constant 0 : index
    %2 = vector.load %arg2[%c0_2, %c0_3] : memref<112x128xf32, #tpu.memory_space<vmem>>, vector<2x10xf32>
    %c2_4 = arith.constant 2 : index
    %c0_5 = arith.constant 0 : index
    %3 = vector.load %arg2[%c2_4, %c0_5] : memref<112x128xf32, #tpu.memory_space<vmem>>, vector<1x10xf32>
    %4 = vector.extract_strided_slice %0 {offsets = [0, 0], sizes = [8, 1], strides = [1, 1]} : vector<8x2xf32> to vector<8x1xf32>
    %5 = vector.extract_strided_slice %2 {offsets = [0, 0], sizes = [1, 10], strides = [1, 1]} : vector<2x10xf32> to vector<1x10xf32>
    %6 = vector.broadcast %4 : vector<8x1xf32> to vector<8x10xf32>
    %7 = vector.broadcast %5 : vector<1x10xf32> to vector<8x10xf32>
    %8 = arith.mulf %6, %7 : vector<8x10xf32>
    %9 = vector.extract_strided_slice %0 {offsets = [0, 1], sizes = [8, 1], strides = [1, 1]} : vector<8x2xf32> to vector<8x1xf32>
    %10 = vector.extract_strided_slice %2 {offsets = [1, 0], sizes = [1, 10], strides = [1, 1]} : vector<2x10xf32> to vector<1x10xf32>
    %11 = vector.broadcast %9 : vector<8x1xf32> to vector<8x10xf32>
    %12 = vector.broadcast %10 : vector<1x10xf32> to vector<8x10xf32>
    %13 = arith.mulf %11, %12 : vector<8x10xf32>
    %14 = arith.addf %8, %13 : vector<8x10xf32>
    %15 = vector.broadcast %3 : vector<1x10xf32> to vector<8x10xf32>
    %16 = arith.addf %14, %15 : vector<8x10xf32>
    %cst = arith.constant 0.000000e+00 : f32
    %17 = vector.broadcast %cst : f32 to vector<8x10xf32>
    %18 = arith.maximumf %16, %17 : vector<8x10xf32>
    %c8 = arith.constant 8 : index
    %c0_6 = arith.constant 0 : index
    %19 = vector.load %arg2[%c8, %c0_6] : memref<112x128xf32, #tpu.memory_space<vmem>>, vector<10x10xf32>
    %c18 = arith.constant 18 : index
    %c0_7 = arith.constant 0 : index
    %20 = vector.load %arg2[%c18, %c0_7] : memref<112x128xf32, #tpu.memory_space<vmem>>, vector<1x10xf32>
    %cst_8 = arith.constant dense<0.000000e+00> : vector<8x10xf32>
    %21 = tpu.matmul %18, %19, %cst_8 {dimension_numbers = #tpu.dot_dimension_numbers<[1], [0], [0], [1], [0, 0, 1, 1], [], []>} : vector<8x10xf32>, vector<10x10xf32>, vector<8x10xf32> -> vector<8x10xf32>
    %22 = vector.broadcast %20 : vector<1x10xf32> to vector<8x10xf32>
    %23 = arith.addf %21, %22 : vector<8x10xf32>
    %cst_9 = arith.constant 0.000000e+00 : f32
    %24 = vector.broadcast %cst_9 : f32 to vector<8x10xf32>
    %25 = arith.maximumf %23, %24 : vector<8x10xf32>
    %c24 = arith.constant 24 : index
    %c0_10 = arith.constant 0 : index
    %26 = vector.load %arg2[%c24, %c0_10] : memref<112x128xf32, #tpu.memory_space<vmem>>, vector<10x10xf32>
    %c34 = arith.constant 34 : index
    %c0_11 = arith.constant 0 : index
    %27 = vector.load %arg2[%c34, %c0_11] : memref<112x128xf32, #tpu.memory_space<vmem>>, vector<1x10xf32>
    %cst_12 = arith.constant dense<0.000000e+00> : vector<8x10xf32>
    %28 = tpu.matmul %25, %26, %cst_12 {dimension_numbers = #tpu.dot_dimension_numbers<[1], [0], [0], [1], [0, 0, 1, 1], [], []>} : vector<8x10xf32>, vector<10x10xf32>, vector<8x10xf32> -> vector<8x10xf32>
    %29 = vector.broadcast %27 : vector<1x10xf32> to vector<8x10xf32>
    %30 = arith.addf %28, %29 : vector<8x10xf32>
    %cst_13 = arith.constant 0.000000e+00 : f32
    %31 = vector.broadcast %cst_13 : f32 to vector<8x10xf32>
    %32 = arith.maximumf %30, %31 : vector<8x10xf32>
    %c40 = arith.constant 40 : index
    %c0_14 = arith.constant 0 : index
    %33 = vector.load %arg2[%c40, %c0_14] : memref<112x128xf32, #tpu.memory_space<vmem>>, vector<10x4xf32>
    %c50 = arith.constant 50 : index
    %c0_15 = arith.constant 0 : index
    %34 = vector.load %arg2[%c50, %c0_15] : memref<112x128xf32, #tpu.memory_space<vmem>>, vector<1x4xf32>
    %cst_16 = arith.constant dense<0.000000e+00> : vector<8x4xf32>
    %35 = tpu.matmul %32, %33, %cst_16 {dimension_numbers = #tpu.dot_dimension_numbers<[1], [0], [0], [1], [0, 0, 1, 1], [], []>} : vector<8x10xf32>, vector<10x4xf32>, vector<8x4xf32> -> vector<8x4xf32>
    %36 = vector.broadcast %34 : vector<1x4xf32> to vector<8x4xf32>
    %37 = arith.addf %35, %36 : vector<8x4xf32>
    %38 = vector.extract_strided_slice %37 {offsets = [0, 2], sizes = [8, 2], strides = [1, 1]} : vector<8x4xf32> to vector<8x2xf32>
    %39 = vector.extract_strided_slice %37 {offsets = [0, 0], sizes = [8, 2], strides = [1, 1]} : vector<8x4xf32> to vector<8x2xf32>
    %cst_17 = arith.constant 5.000000e-01 : f32
    %40 = vector.broadcast %cst_17 : f32 to vector<8x2xf32>
    %41 = arith.mulf %40, %38 : vector<8x2xf32>
    %42 = math.exp %41 : vector<8x2xf32>
    %43 = arith.mulf %1, %42 : vector<8x2xf32>
    %44 = arith.addf %43, %39 : vector<8x2xf32>
    %c56 = arith.constant 56 : index
    %c0_18 = arith.constant 0 : index
    %45 = vector.load %arg2[%c56, %c0_18] : memref<112x128xf32, #tpu.memory_space<vmem>>, vector<2x10xf32>
    %c58 = arith.constant 58 : index
    %c0_19 = arith.constant 0 : index
    %46 = vector.load %arg2[%c58, %c0_19] : memref<112x128xf32, #tpu.memory_space<vmem>>, vector<1x10xf32>
    %47 = vector.extract_strided_slice %44 {offsets = [0, 0], sizes = [8, 1], strides = [1, 1]} : vector<8x2xf32> to vector<8x1xf32>
    %48 = vector.extract_strided_slice %45 {offsets = [0, 0], sizes = [1, 10], strides = [1, 1]} : vector<2x10xf32> to vector<1x10xf32>
    %49 = vector.broadcast %47 : vector<8x1xf32> to vector<8x10xf32>
    %50 = vector.broadcast %48 : vector<1x10xf32> to vector<8x10xf32>
    %51 = arith.mulf %49, %50 : vector<8x10xf32>
    %52 = vector.extract_strided_slice %44 {offsets = [0, 1], sizes = [8, 1], strides = [1, 1]} : vector<8x2xf32> to vector<8x1xf32>
    %53 = vector.extract_strided_slice %45 {offsets = [1, 0], sizes = [1, 10], strides = [1, 1]} : vector<2x10xf32> to vector<1x10xf32>
    %54 = vector.broadcast %52 : vector<8x1xf32> to vector<8x10xf32>
    %55 = vector.broadcast %53 : vector<1x10xf32> to vector<8x10xf32>
    %56 = arith.mulf %54, %55 : vector<8x10xf32>
    %57 = arith.addf %51, %56 : vector<8x10xf32>
    %58 = vector.broadcast %46 : vector<1x10xf32> to vector<8x10xf32>
    %59 = arith.addf %57, %58 : vector<8x10xf32>
    %cst_20 = arith.constant 0.000000e+00 : f32
    %60 = vector.broadcast %cst_20 : f32 to vector<8x10xf32>
    %61 = arith.maximumf %59, %60 : vector<8x10xf32>
    %c64 = arith.constant 64 : index
    %c0_21 = arith.constant 0 : index
    %62 = vector.load %arg2[%c64, %c0_21] : memref<112x128xf32, #tpu.memory_space<vmem>>, vector<10x10xf32>
    %c74 = arith.constant 74 : index
    %c0_22 = arith.constant 0 : index
    %63 = vector.load %arg2[%c74, %c0_22] : memref<112x128xf32, #tpu.memory_space<vmem>>, vector<1x10xf32>
    %cst_23 = arith.constant dense<0.000000e+00> : vector<8x10xf32>
    %64 = tpu.matmul %61, %62, %cst_23 {dimension_numbers = #tpu.dot_dimension_numbers<[1], [0], [0], [1], [0, 0, 1, 1], [], []>} : vector<8x10xf32>, vector<10x10xf32>, vector<8x10xf32> -> vector<8x10xf32>
    %65 = vector.broadcast %63 : vector<1x10xf32> to vector<8x10xf32>
    %66 = arith.addf %64, %65 : vector<8x10xf32>
    %cst_24 = arith.constant 0.000000e+00 : f32
    %67 = vector.broadcast %cst_24 : f32 to vector<8x10xf32>
    %68 = arith.maximumf %66, %67 : vector<8x10xf32>
    %c80 = arith.constant 80 : index
    %c0_25 = arith.constant 0 : index
    %69 = vector.load %arg2[%c80, %c0_25] : memref<112x128xf32, #tpu.memory_space<vmem>>, vector<10x10xf32>
    %c90 = arith.constant 90 : index
    %c0_26 = arith.constant 0 : index
    %70 = vector.load %arg2[%c90, %c0_26] : memref<112x128xf32, #tpu.memory_space<vmem>>, vector<1x10xf32>
    %cst_27 = arith.constant dense<0.000000e+00> : vector<8x10xf32>
    %71 = tpu.matmul %68, %69, %cst_27 {dimension_numbers = #tpu.dot_dimension_numbers<[1], [0], [0], [1], [0, 0, 1, 1], [], []>} : vector<8x10xf32>, vector<10x10xf32>, vector<8x10xf32> -> vector<8x10xf32>
    %72 = vector.broadcast %70 : vector<1x10xf32> to vector<8x10xf32>
    %73 = arith.addf %71, %72 : vector<8x10xf32>
    %cst_28 = arith.constant 0.000000e+00 : f32
    %74 = vector.broadcast %cst_28 : f32 to vector<8x10xf32>
    %75 = arith.maximumf %73, %74 : vector<8x10xf32>
    %c96 = arith.constant 96 : index
    %c0_29 = arith.constant 0 : index
    %76 = vector.load %arg2[%c96, %c0_29] : memref<112x128xf32, #tpu.memory_space<vmem>>, vector<10x2xf32>
    %c106 = arith.constant 106 : index
    %c0_30 = arith.constant 0 : index
    %77 = vector.load %arg2[%c106, %c0_30] : memref<112x128xf32, #tpu.memory_space<vmem>>, vector<1x2xf32>
    %cst_31 = arith.constant dense<0.000000e+00> : vector<8x2xf32>
    %78 = tpu.matmul %75, %76, %cst_31 {dimension_numbers = #tpu.dot_dimension_numbers<[1], [0], [0], [1], [0, 0, 1, 1], [], []>} : vector<8x10xf32>, vector<10x2xf32>, vector<8x2xf32> -> vector<8x2xf32>
    %79 = vector.broadcast %77 : vector<1x2xf32> to vector<8x2xf32>
    %80 = arith.addf %78, %79 : vector<8x2xf32>
    %c0_32 = arith.constant 0 : index
    %c0_33 = arith.constant 0 : index
    %81 = vector.load %arg3[%c0_32, %c0_33] : memref<8x8xf32, #tpu.memory_space<vmem>>, vector<8x4xf32>
    tpu.vector_store %arg3[%c0_32, %c0_33], %37 {strides = array<i32>} : memref<8x8xf32, #tpu.memory_space<vmem>>, vector<8x4xf32>,
    %c0_34 = arith.constant 0 : index
    %c4 = arith.constant 4 : index
    %82 = vector.load %arg3[%c0_34, %c4] : memref<8x8xf32, #tpu.memory_space<vmem>>, vector<8x2xf32>
    tpu.vector_store %arg3[%c0_34, %c4], %44 {strides = array<i32>} : memref<8x8xf32, #tpu.memory_space<vmem>>, vector<8x2xf32>,
    %c0_35 = arith.constant 0 : index
    %c6 = arith.constant 6 : index
    %83 = vector.load %arg3[%c0_35, %c6] : memref<8x8xf32, #tpu.memory_space<vmem>>, vector<8x2xf32>
    tpu.vector_store %arg3[%c0_35, %c6], %80 {strides = array<i32>} : memref<8x8xf32, #tpu.memory_space<vmem>>, vector<8x2xf32>,
    return
  }
  func.func @transform_0(%arg0: i32) -> (i32, i32) {
    %c0_i32 = arith.constant 0 : i32
    %c0_i32_0 = arith.constant 0 : i32
    return %arg0, %c0_i32 : i32, i32
  }
  func.func @transform_1(%arg0: i32) -> (i32, i32) {
    %c0_i32 = arith.constant 0 : i32
    %c0_i32_0 = arith.constant 0 : i32
    %c0_i32_1 = arith.constant 0 : i32
    return %c0_i32, %c0_i32_0 : i32, i32
  }
  func.func @transform_2(%arg0: i32) -> (i32, i32) {
    %c0_i32 = arith.constant 0 : i32
    %c0_i32_0 = arith.constant 0 : i32
    return %arg0, %c0_i32 : i32, i32
  }
}

</mosaic_0001>

<bundles_post_ra>
// kernel: vae_forward.1
= control target key start
LH: loop header
LB: loop body
LE: loop exit
PB: predicated region body
PF: predicated region fallthrough
CT: control target
= control target key end

     0   :  { %7 = vsyncpa [#allocation3], 0  ;;  %s761_s9 = smov [#allocation2]   ;;  %s870_s0 = inlined_call_operand.vmem [shape: f32[8,4], index: 0, kind: input, shape index: {}]   ;;  %s871_s1 = inlined_call_operand.hbm [shape: f32[112,128], index: 1, kind: input, shape index: {}]   ;;  %s872_s2 = inlined_call_operand.vmem [shape: f32[8,8], index: 2, kind: output, shape index: {}]  }
   0x1   :  { %s15_s10 = sshll.u32 %s761_s9, 4  ;;  %s737_s13 = scalar_lea.hbm %s871_s1, 1792  ;;  %s16_s10 = int_to_ptr.vmem [resolvable:$true] %s15_s10 }
   0x2   :  { %p738_p0 = scmp.ne.s32.totalorder %s871_s1, %s737_s13  ;;  %p741_p1 = scmp.lt.u32.totalorder %s737_s13, %s871_s1 }
   0x4   :  { %p743_p2 = pnand %p741_p1, %p738_p0 }
   0x6   :  { %746 = shalt.err (!%p743_p2)
}
   0x7   :  { %s747_s18 = scalar_lea.vmem %s16_s10, 1792  ;;  %p752_p4 = scmp.lt.s32.totalorder %s16_s10, %s16_s10 }
   0x8   :  { %p748_p3 = scmp.ne.s32.totalorder %s16_s10, %s747_s18  ;;  %p753_p5 = scmp.lt.s32.totalorder %s747_s18, %s747_s18 }
   0xa   :  { %p754_p6 = por %p753_p5, %p752_p4 }
   0xc   :  { %p755_p7 = pnand %p754_p6, %p748_p3 }
   0xe   :  { %758 = shalt.err (!%p755_p7)
}
   0xf   :  { %s762_s19 = smov 128   ;;  %s763_s20 = smov 8  }
  0x10   :  { %21 = dma.hbm_to_vmem [thread:$0]  %s871_s1, 1792, %s16_s10, [#allocation3], %s762_s19, %s762_s19, %s763_s20  }
  0x11   :  { %759 = dma.done.wait [#allocation3], 1792  }
  0x12   :  { %760 = vsyncadd [#allocation3], 4294965504  ;;  %v764_v0 = vmov 0   ;;  %v804_v1 = vld [vmem:[%s870_s0] sm:$0xff]  ;;  %v765_v2 = vmov 1   ;;  %v54_v3 = vld [vmem:[#allocation2 + $0x8] sm:$0xff]  ;;  %v33_v9 = vlaneseq }
  0x13   :  { %730 = vset.pattern.permute.xlu0 %v764_v0  ;;  %v55_v4 = vld [vmem:[#allocation2 + $0x10] sm:$0x3]  ;;  %vm65_vm0 = vcmask 1041408   ;;  %v766_v6 = vmov 0.0|0.0   ;;  %vm767_vm1 = vmmov 1   ;;  %vm768_vm3 = vmmov 0  }
  0x14   :  { %30 = vperm.xlu0 %730, %v804_v1   ;;  %v694_v5 = vpack.c.bf16 %v55_v4, %v54_v3  ;;  %693 = vmatprep.subr.bf16.mxu0 %v766_v6  ;;  %vm809_vm2 = vmpackc.low %vm65_vm0, %vm767_vm1  ;;  %v769_v8 = vmov 0.0   ;;  %v821_v10 = vshrl.u32 %v33_v9, 7  ;;  %v26_v13 = vld [vmem:[#allocation2] sm:$0x3]  ;;  %v613_v20 = vld [vmem:[#allocation2 + $0x2] ss:$0 sm:$0xff] }
  0x15   :  { %697 = vmatprep.subr.bf16.mxu1 %v766_v6  ;;  %655 = vmatprep.mubr.msk.f32.mxu0 %vm768_vm3, %v769_v8  ;;  %vm61_vm4 = vcmask 80896   ;;  %v140_v24 = vld [vmem:[#allocation2 + $0x18] sm:$0xff]  ;;  %v141_v25 = vld [vmem:[#allocation2 + $0x20] sm:$0x3]  ;;  %v614_v27 = vld [vmem:[#allocation2 + $0x12] ss:$0 sm:$0xff] }
  0x16   :  { %696 = vmatpush3.bf16.msk.msra.mxu0 %vm809_vm2, %v694_v5  ;;  %662 = vmatprep.mubr.msk.f32.mxu1 %vm768_vm3, %v769_v8  ;;  %v35_v11 = vsub.s32 0, %v821_v10  ;;  %v44_v12 = vsub.s32 1, %v821_v10  ;;  %v698_v26 = vpack.c.bf16 %v141_v25, %v140_v24  ;;  %v224_v32 = vld [vmem:[#allocation2 + $0x28] sm:$0xff]  ;;  %v225_v33 = vld [vmem:[#allocation2 + $0x30] sm:$0x3]  ;;  %v770_v40 = vmov 2  }
  0x17   :  { %701 = vmatprep.subr.bf16.mxu0 %v766_v6  ;;  %v702_v34 = vpack.c.bf16 %v225_v33, %v224_v32  ;;  %v617_v35 = vld [vmem:[#allocation2 + $0x22] ss:$0 sm:$0xff]  ;;  %732 = vset.pattern.permute.xlu1 %v770_v40  ;;  %v771_v41 = vmov 3   ;;  %v620_v42 = vld [vmem:[#allocation2 + $0x32] ss:$0 sm:$0xff]  ;;  %vm595_vm5 = vcmask 31744  }
  0x18   :  { %731 = vset.pattern.permute.xlu0 %v765_v2  ;;  %v36_v15 = vrot.slane %v26_v13, %v35_v11  ;;  %v45_v16 = vrot.slane %v26_v13, %v44_v12  ;;  %700 = vmatpush3.bf16.msk.msra.mxu1 %vm809_vm2, %v698_v26  ;;  %s772_s25 = smov 2   ;;  %v344_v52 = vld [vmem:[#allocation2 + $0x40] sm:$0xff]  ;;  %v345_v53 = vld [vmem:[#allocation2 + $0x48] sm:$0x3]  ;;  %vm600_vm6 = vcmask 48160   ;;  %v428_v3 = vld [vmem:[#allocation2 + $0x50] sm:$0xff] }
  0x19   :  { %39 = vperm.xlu0 %731, %v804_v1   ;;  %705 = vmatprep.subr.bf16.mxu1 %v766_v6  ;;  %v706_v54 = vpack.c.bf16 %v345_v53, %v344_v52  ;;  %v316_v56 = vld [vmem:[#allocation2 + $0x38] sm:$0x3]  ;;  %v623_v63 = vld [vmem:[#allocation2 + $0x3a] ss:$0 sm:$0xff]  ;;  %v512_v13 = vld [vmem:[#allocation2 + $0x60] sm:$0xff]  ;;  %s773_s28 = smov 6  }
  0x1a   :  { %v326_v58 = vrot.slane %v316_v56, %v35_v11  ;;  %v335_v59 = vrot.slane %v316_v56, %v44_v12  ;;  %v429_v4 = vld [vmem:[#allocation2 + $0x58] sm:$0x3]  ;;  %vm606_vm7 = vcmask 64560  }
  0x1b   :  { %v710_v5 = vpack.c.bf16 %v429_v4, %v428_v3 }
  0x1d   :  { %734 = vset.pattern.permute.xlu0 %v771_v41 }
  0x93   :  { %v31_v14 = vpop.permute.xlu0 %30 }
  0x94   :  { %v37_v18 = vmul.f32 %v36_v15, %v31_v14  ;;  %v513_v14 = vld [vmem:[#allocation2 + $0x68] sm:$0x3] }
  0x95   :  { %v714_v15 = vpack.c.bf16 %v513_v14, %v512_v13 }
  0x98   :  { %v40_v17 = vpop.permute.xlu0 %39 }
  0x99   :  { %v46_v19 = vmul.f32 %v45_v16, %v40_v17 }
  0x9b   :  { %v47_v21 = vadd.f32 %v46_v19, %v37_v18 }
  0x9d   :  { %v52_v22 = vadd.f32 %v613_v20, %v47_v21  ;;  %v630_v20 = vld [vmem:[#allocation2 + $0x6a] ss:$0 sm:$0xff] }
  0x9f   :  { %v53_v23 = vmax.f32 %v52_v22, 0.0 }
  0xa1   :  { %656 = vmatmul.mubr.msk.f32.vlgmr.msra.gmra.mrb[0].mxu0 %vm61_vm4, %v53_v23 }
  0xa2   :  { %669 = vmatprep.mubr.msk.f32.mxu0 %vm768_vm3, %v769_v8  ;;  %704 = vmatpush3.bf16.msk.msra.mxu0 %vm809_vm2, %v702_v34 }
  0xa3   :  { %709 = vmatprep.subr.bf16.mxu0 %v766_v6 }
 0x174   :  { %v135_v28 = vpop.f32.mrb[0].mxu0 }
 0x175   :  { %v136_v29 = vadd.f32 %v614_v27, %v135_v28  ;;  %v657_v30 = vpop.f32.mrb[1].mxu0 }
 0x177   :  { %v139_v31 = vmax.f32 %v136_v29, 0.0 }
 0x179   :  { %663 = vmatmul.mubr.msk.f32.vlgmr.msra.gmra.mrb[0].mxu1 %vm61_vm4, %v139_v31 }
 0x17a   :  { %676 = vmatprep.mubr.msk.f32.mxu1 %vm768_vm3, %v769_v8  ;;  %708 = vmatpush3.bf16.msk.msra.mxu1 %vm809_vm2, %v706_v54 }
 0x17b   :  { %713 = vmatprep.subr.bf16.mxu1 %v766_v6  ;;  %v624_v6 = vld [vmem:[#allocation2 + $0x4a] ss:$0 sm:$0xff] }
 0x24c   :  { %v219_v36 = vpop.f32.mrb[0].mxu1 }
 0x24d   :  { %v220_v37 = vadd.f32 %v617_v35, %v219_v36  ;;  %v664_v38 = vpop.f32.mrb[1].mxu1 }
 0x24f   :  { %v223_v39 = vmax.f32 %v220_v37, 0.0 }
 0x251   :  { %670 = vmatmul.mubr.msk.f32.vlgmr.msra.gmra.mrb[2].mxu0 %vm61_vm4, %v223_v39 }
 0x252   :  { %683 = vmatprep.mubr.msk.f32.mxu0 %vm768_vm3, %v769_v8  ;;  %712 = vmatpush3.bf16.msk.msra.mxu0 %vm809_vm2, %v710_v5 }
 0x324   :  { %v303_v43 = vpop.f32.mrb[2].mxu0 }
 0x325   :  { %v304_v44 = vadd.f32 %v620_v42, %v303_v43  ;;  %v671_v45 = vpop.f32.mrb[3].mxu0 }
 0x327   :  { %596 = vst.msk [vmem:[%s872_s2] sm:$0xff] %vm595_vm5, %v304_v44  ;;  %312 = vrot.lane.b32.xlu1 %v304_v44, %s772_s25  ;;  %v307_v46 = vmul.f32 0.5, %v304_v44 }
 0x329   :  { %v308_v47 = vmul.f32 1.442695, %v307_v46 }
 0x32b   :  { %735 = vpow2.f32 %v308_v47 }
 0x335   :  { %v736_v48 = vpop.eup %735 }
 0x336   :  { %v310_v49 = vmul.f32 %v736_v48, %v804_v1 }
 0x399   :  { %v313_v50 = vpop.permute.xlu1 %312 }
 0x39a   :  { %v315_v51 = vadd.f32 %v313_v50, %v310_v49 }
 0x39c   :  { %597 = vrot.lane.b32.xlu0 %v315_v51, %s772_s25  ;;  %320 = vperm.xlu1 %732, %v315_v51  }
 0x3a0   :  { %733 = vset.pattern.permute.xlu1 %v771_v41 }
 0x3a1   :  { %329 = vperm.xlu1 %733, %v315_v51  }
 0x40e   :  { %v598_v55 = vpop.permute.xlu0 %597 }
 0x40f   :  { %601 = vst.msk [vmem:[%s872_s2] sm:$0xff] %vm600_vm6, %v598_v55 }
 0x41b   :  { %v321_v57 = vpop.permute.xlu1 %320 }
 0x41c   :  { %v327_v61 = vmul.f32 %v326_v58, %v321_v57 }
 0x420   :  { %v330_v60 = vpop.permute.xlu1 %329 }
 0x421   :  { %v336_v62 = vmul.f32 %v335_v59, %v330_v60 }
 0x423   :  { %v337_v0 = vadd.f32 %v336_v62, %v327_v61 }
 0x425   :  { %v342_v1 = vadd.f32 %v623_v63, %v337_v0 }
 0x427   :  { %v343_v2 = vmax.f32 %v342_v1, 0.0 }
 0x429   :  { %677 = vmatmul.mubr.msk.f32.vlgmr.msra.gmra.mrb[2].mxu1 %vm61_vm4, %v343_v2 }
 0x42a   :  { %690 = vmatprep.mubr.msk.f32.mxu1 %vm768_vm3, %v769_v8  ;;  %716 = vmatpush3.bf16.msk.msra.mxu1 %vm809_vm2, %v714_v15  ;;  %v627_v8 = vld [vmem:[#allocation2 + $0x5a] ss:$0 sm:$0xff] }
 0x4fc   :  { %v423_v9 = vpop.f32.mrb[2].mxu1 }
 0x4fd   :  { %v424_v10 = vadd.f32 %v624_v6, %v423_v9  ;;  %v678_v11 = vpop.f32.mrb[3].mxu1 }
 0x4ff   :  { %v427_v12 = vmax.f32 %v424_v10, 0.0 }
 0x501   :  { %684 = vmatmul.mubr.msk.f32.vlgmr.msra.gmra.mrb[4].mxu0 %vm61_vm4, %v427_v12 }
 0x5d4   :  { %v507_v16 = vpop.f32.mrb[4].mxu0 }
 0x5d5   :  { %v508_v17 = vadd.f32 %v627_v8, %v507_v16  ;;  %v685_v18 = vpop.f32.mrb[5].mxu0 }
 0x5d7   :  { %v511_v19 = vmax.f32 %v508_v17, 0.0 }
 0x5d9   :  { %691 = vmatmul.mubr.msk.f32.vlgmr.msra.gmra.mrb[4].mxu1 %vm61_vm4, %v511_v19 }
 0x6ac   :  { %v591_v21 = vpop.f32.mrb[4].mxu1 }
 0x6ad   :  { %v592_v22 = vadd.f32 %v630_v20, %v591_v21  ;;  %v692_v23 = vpop.f32.mrb[5].mxu1 }
 0x6af   :  { %603 = vrot.lane.b32.xlu1 %v592_v22, %s773_s28 }
 0x721   :  { %v604_v24 = vpop.permute.xlu1 %603 }
 0x722   :  { %607 = vst.msk [vmem:[%s872_s2] sm:$0xff] %vm606_vm7, %v604_v24 }
 0x723   :  { %612 = vsyncpa [#allocation3], 1 }

</bundles_post_ra>
